<compile_context>
chip_gen: v5e
topology: v5e:2x2
jax: 0.10.0
libtpu: 0.0.40
codegen_flags: <defaults>
</compile_context>

<pallas_src>
import jax
import jax.numpy as jnp
from jax.experimental import pallas as pl
from jax.experimental.pallas import tpu as pltpu

LANE = 128
SUBLANE = 8
MAX_TB = 2048  # batch tile along the lane axis


def _round_up(x, m):
    return (x + m - 1) // m * m


def mlp_kernel(x_ref, w0_ref, b0_ref, w1_ref, b1_ref, w2_ref, b2_ref, o_ref):
    # Transposed layout: activations are (features, batch_tile); batch on lanes.
    x = x_ref[...]                                                    # (8,  TB)
    h = jnp.dot(w0_ref[...], x, preferred_element_type=jnp.float32)   # (d0, TB)
    h = jnp.maximum(h + b0_ref[...], 0.0)                             # hidden ReLU
    h = jnp.dot(w1_ref[...], h, preferred_element_type=jnp.float32)   # (d1, TB)
    h = jnp.maximum(h + b1_ref[...], 0.0)                             # hidden ReLU
    o = jnp.dot(w2_ref[...], h, preferred_element_type=jnp.float32)   # (8,  TB)
    o_ref[...] = o + b2_ref[...]                                      # Identity output act


def prepare_params(params):
    """Pad & arrange PyTorch-layout weights (W:(out,in), b:(out,)) once, outside the hot path.

    The transposed activation layout keeps the (out, in) orientation (W @ x), so no
    transposes are needed; feature dims are only rounded up to the sublane multiple (8).
    """
    (w0, b0), (w1, b1), (w2, b2) = params
    d_in = _round_up(w0.shape[1], SUBLANE)    # 3  -> 8
    d0 = _round_up(w0.shape[0], SUBLANE)      # 32 -> 32
    d1 = _round_up(w1.shape[0], SUBLANE)      # 32 -> 32
    d_out = _round_up(w2.shape[0], SUBLANE)   # 1  -> 8

    def pad2(a, r, c):
        return jnp.pad(a, ((0, r - a.shape[0]), (0, c - a.shape[1])))

    return (
        pad2(w0, d0, d_in),
        pad2(b0.reshape(-1, 1), d0, 1),
        pad2(w1, d1, d0),
        pad2(b1.reshape(-1, 1), d1, 1),
        pad2(w2, d_out, d1),
        pad2(b2.reshape(-1, 1), d_out, 1),
    )


@jax.jit
def mlp_forward(x, padded_params):
    """x: (batch, 3) float32.  padded_params: output of prepare_params."""
    batch, in_dim = x.shape
    w0p, b0p, w1p, b1p, w2p, b2p = padded_params
    d_in = w0p.shape[1]
    d0 = w0p.shape[0]
    d1 = w1p.shape[0]
    d_out = w2p.shape[0]

    # Batch lives on the lane axis: tile it and pad to a whole number of tiles.
    tb = min(MAX_TB, _round_up(batch, LANE))
    b_pad = _round_up(batch, tb)
    grid = (b_pad // tb,)

    # (batch, 3) -> (8, b_pad): ~2.7x inflation instead of the previous 42x padded copy.
    x_t = jnp.pad(x.T, ((0, d_in - in_dim), (0, b_pad - batch)))

    def resident(shape):
        return pl.BlockSpec(shape, lambda i: (0, 0))  # weights stay VMEM-resident

    flops = 2 * b_pad * (d_in * d0 + d0 * d1 + d1 * d_out)
    bytes_accessed = 4 * (
        d_in * b_pad + d_out * b_pad
        + d0 * d_in + d0 + d1 * d0 + d1 + d_out * d1 + d_out
    )

    out = pl.pallas_call(
        mlp_kernel,
        out_shape=jax.ShapeDtypeStruct((d_out, b_pad), jnp.float32),
        grid=grid,
        in_specs=[
            pl.BlockSpec((d_in, tb), lambda i: (0, i)),   # x^T tile (streamed over batch)
            resident((d0, d_in)),                         # W0
            resident((d0, 1)),                            # b0
            resident((d1, d0)),                           # W1
            resident((d1, 1)),                            # b1
            resident((d_out, d1)),                        # W2
            resident((d_out, 1)),                         # b2
        ],
        out_specs=pl.BlockSpec((d_out, tb), lambda i: (0, i)),
        compiler_params=pltpu.CompilerParams(
            dimension_semantics=("parallel",),            # shard batch tiles across TCs (v7x)
            vmem_limit_bytes=32 << 20,                    # tiles are tiny; safe on v7x 64 MiB
        ),
        cost_estimate=pl.CostEstimate(
            flops=flops, transcendentals=0, bytes_accessed=bytes_accessed),
    )(x_t, w0p, b0p, w1p, b1p, w2p, b2p)

    # Row 0 of the transposed output is the single regression output.
    return out[0, :batch].reshape(batch, 1)


def init_params(key, n_layers, n_units):
    """Deterministic init matching PyTorch nn.Linear default (U[-1/sqrt(fan_in), ...])."""
    dims = [3] + list(n_units) + [1]
    params = []
    for i in range(len(dims) - 1):
        fan_in, fan_out = dims[i], dims[i + 1]
        key, kw, kb = jax.random.split(key, 3)
        bound = 1.0 / jnp.sqrt(jnp.float32(fan_in))
        w = jax.random.uniform(kw, (fan_out, fan_in), jnp.float32, -bound, bound)
        b = jax.random.uniform(kb, (fan_out,), jnp.float32, -bound, bound)
        params.append((w, b))
    return params


def reference_forward(x, params):
    h = x
    for i, (w, b) in enumerate(params):
        h = h @ w.T + b
        if i < len(params) - 1:
            h = jnp.maximum(h, 0.0)   # hidden_activation = ReLU
    return h                          # output_activation = Identity


if __name__ == "__main__":
    key = jax.random.PRNGKey(0)
    k_x, k_p = jax.random.split(key)

    n_layers = 2
    n_units = [32, 32]

    batch = 8
    x = jax.random.normal(k_x, (batch, 3), jnp.float32)
    params = init_params(k_p, n_layers, n_units)

    padded_params = prepare_params(params)  # hoisted out of the hot path
    y = mlp_forward(x, padded_params)
    y = jax.block_until_ready(y)

    y_ref = reference_forward(x, params)
    assert y.shape == (batch, 1)
    assert jnp.allclose(y, y_ref, atol=1e-5, rtol=1e-5), "mismatch vs reference"

    print("KERNEL_OK")
</pallas_src>

<mosaic_0001>
module attributes {stable_mosaic.version = 11 : i64} {
  func.func @mlp_kernel(%arg0: i32, %arg1: memref<8x128xf32, #tpu.memory_space<vmem>>, %arg2: memref<32x8xf32, #tpu.memory_space<vmem>>, %arg3: memref<32x1xf32, #tpu.memory_space<vmem>>, %arg4: memref<32x32xf32, #tpu.memory_space<vmem>>, %arg5: memref<32x1xf32, #tpu.memory_space<vmem>>, %arg6: memref<8x32xf32, #tpu.memory_space<vmem>>, %arg7: memref<8x1xf32, #tpu.memory_space<vmem>>, %arg8: memref<8x128xf32, #tpu.memory_space<vmem>>) attributes {dimension_semantics = [#tpu.dimension_semantics<parallel>], iteration_bounds = array<i64: 1>, scalar_prefetch = 0 : i64, scratch_operands = 0 : i64, tpu.core_type = #tpu.core_type<tc>, window_params = [{transform_indices = @transform_0, window_bounds = array<i64: 8, 128>}, {pipeline_mode = #tpu.pipeline_mode<synchronous>, transform_indices = @transform_1, window_bounds = array<i64: 32, 8>}, {pipeline_mode = #tpu.pipeline_mode<synchronous>, transform_indices = @transform_2, window_bounds = array<i64: 32, 1>}, {pipeline_mode = #tpu.pipeline_mode<synchronous>, transform_indices = @transform_3, window_bounds = array<i64: 32, 32>}, {pipeline_mode = #tpu.pipeline_mode<synchronous>, transform_indices = @transform_4, window_bounds = array<i64: 32, 1>}, {pipeline_mode = #tpu.pipeline_mode<synchronous>, transform_indices = @transform_5, window_bounds = array<i64: 8, 32>}, {pipeline_mode = #tpu.pipeline_mode<synchronous>, transform_indices = @transform_6, window_bounds = array<i64: 8, 1>}, {transform_indices = @transform_7, window_bounds = array<i64: 8, 128>}]} {
    %c0 = arith.constant 0 : index
    %c0_0 = arith.constant 0 : index
    %0 = vector.load %arg1[%c0, %c0_0] : memref<8x128xf32, #tpu.memory_space<vmem>>, vector<8x128xf32>
    %c0_1 = arith.constant 0 : index
    %c0_2 = arith.constant 0 : index
    %1 = vector.load %arg2[%c0_1, %c0_2] : memref<32x8xf32, #tpu.memory_space<vmem>>, vector<32x8xf32>
    %cst = arith.constant dense<0.000000e+00> : vector<32x128xf32>
    %2 = tpu.matmul %1, %0, %cst {dimension_numbers = #tpu.dot_dimension_numbers<[1], [0], [0], [1], [0, 0, 1, 1], [], []>} : vector<32x8xf32>, vector<8x128xf32>, vector<32x128xf32> -> vector<32x128xf32>
    %c0_3 = arith.constant 0 : index
    %c0_4 = arith.constant 0 : index
    %3 = vector.load %arg3[%c0_3, %c0_4] : memref<32x1xf32, #tpu.memory_space<vmem>>, vector<32x1xf32>
    %4 = vector.broadcast %3 : vector<32x1xf32> to vector<32x128xf32>
    %5 = arith.addf %2, %4 : vector<32x128xf32>
    %cst_5 = arith.constant 0.000000e+00 : f32
    %6 = vector.broadcast %cst_5 : f32 to vector<32x128xf32>
    %7 = arith.maximumf %5, %6 : vector<32x128xf32>
    %c0_6 = arith.constant 0 : index
    %c0_7 = arith.constant 0 : index
    %8 = vector.load %arg4[%c0_6, %c0_7] : memref<32x32xf32, #tpu.memory_space<vmem>>, vector<32x32xf32>
    %cst_8 = arith.constant dense<0.000000e+00> : vector<32x128xf32>
    %9 = tpu.matmul %8, %7, %cst_8 {dimension_numbers = #tpu.dot_dimension_numbers<[1], [0], [0], [1], [0, 0, 1, 1], [], []>} : vector<32x32xf32>, vector<32x128xf32>, vector<32x128xf32> -> vector<32x128xf32>
    %c0_9 = arith.constant 0 : index
    %c0_10 = arith.constant 0 : index
    %10 = vector.load %arg5[%c0_9, %c0_10] : memref<32x1xf32, #tpu.memory_space<vmem>>, vector<32x1xf32>
    %11 = vector.broadcast %10 : vector<32x1xf32> to vector<32x128xf32>
    %12 = arith.addf %9, %11 : vector<32x128xf32>
    %cst_11 = arith.constant 0.000000e+00 : f32
    %13 = vector.broadcast %cst_11 : f32 to vector<32x128xf32>
    %14 = arith.maximumf %12, %13 : vector<32x128xf32>
    %c0_12 = arith.constant 0 : index
    %c0_13 = arith.constant 0 : index
    %15 = vector.load %arg6[%c0_12, %c0_13] : memref<8x32xf32, #tpu.memory_space<vmem>>, vector<8x32xf32>
    %cst_14 = arith.constant dense<0.000000e+00> : vector<8x128xf32>
    %16 = tpu.matmul %15, %14, %cst_14 {dimension_numbers = #tpu.dot_dimension_numbers<[1], [0], [0], [1], [0, 0, 1, 1], [], []>} : vector<8x32xf32>, vector<32x128xf32>, vector<8x128xf32> -> vector<8x128xf32>
    %c0_15 = arith.constant 0 : index
    %c0_16 = arith.constant 0 : index
    %17 = vector.load %arg7[%c0_15, %c0_16] : memref<8x1xf32, #tpu.memory_space<vmem>>, vector<8x1xf32>
    %18 = vector.broadcast %17 : vector<8x1xf32> to vector<8x128xf32>
    %19 = arith.addf %16, %18 : vector<8x128xf32>
    %c0_17 = arith.constant 0 : index
    %c0_18 = arith.constant 0 : index
    %20 = vector.load %arg8[%c0_17, %c0_18] : memref<8x128xf32, #tpu.memory_space<vmem>>, vector<8x128xf32>
    tpu.vector_store %arg8[%c0_17, %c0_18], %19 {strides = array<i32>} : memref<8x128xf32, #tpu.memory_space<vmem>>, vector<8x128xf32>,
    return
  }
  func.func @transform_0(%arg0: i32) -> (i32, i32) {
    %c0_i32 = arith.constant 0 : i32
    %c0_i32_0 = arith.constant 0 : i32
    return %c0_i32, %arg0 : i32, i32
  }
  func.func @transform_1(%arg0: i32) -> (i32, i32) {
    %c0_i32 = arith.constant 0 : i32
    %c0_i32_0 = arith.constant 0 : i32
    %c0_i32_1 = arith.constant 0 : i32
    return %c0_i32, %c0_i32_0 : i32, i32
  }
  func.func @transform_2(%arg0: i32) -> (i32, i32) {
    %c0_i32 = arith.constant 0 : i32
    %c0_i32_0 = arith.constant 0 : i32
    %c0_i32_1 = arith.constant 0 : i32
    return %c0_i32, %c0_i32_0 : i32, i32
  }
  func.func @transform_3(%arg0: i32) -> (i32, i32) {
    %c0_i32 = arith.constant 0 : i32
    %c0_i32_0 = arith.constant 0 : i32
    %c0_i32_1 = arith.constant 0 : i32
    return %c0_i32, %c0_i32_0 : i32, i32
  }
  func.func @transform_4(%arg0: i32) -> (i32, i32) {
    %c0_i32 = arith.constant 0 : i32
    %c0_i32_0 = arith.constant 0 : i32
    %c0_i32_1 = arith.constant 0 : i32
    return %c0_i32, %c0_i32_0 : i32, i32
  }
  func.func @transform_5(%arg0: i32) -> (i32, i32) {
    %c0_i32 = arith.constant 0 : i32
    %c0_i32_0 = arith.constant 0 : i32
    %c0_i32_1 = arith.constant 0 : i32
    return %c0_i32, %c0_i32_0 : i32, i32
  }
  func.func @transform_6(%arg0: i32) -> (i32, i32) {
    %c0_i32 = arith.constant 0 : i32
    %c0_i32_0 = arith.constant 0 : i32
    %c0_i32_1 = arith.constant 0 : i32
    return %c0_i32, %c0_i32_0 : i32, i32
  }
  func.func @transform_7(%arg0: i32) -> (i32, i32) {
    %c0_i32 = arith.constant 0 : i32
    %c0_i32_0 = arith.constant 0 : i32
    return %c0_i32, %arg0 : i32, i32
  }
}

</mosaic_0001>

<bundles_post_ra>
// kernel: mlp_forward.1
= control target key start
LH: loop header
LB: loop body
LE: loop exit
PB: predicated region body
PF: predicated region fallthrough
CT: control target
= control target key end

     0   :  { %vm55_vm0 = vcmask 64512   ;;  %v228_v2 = vmov 0   ;;  %vm129_vm1 = vcmask 261120   ;;  %s338_s0 = inlined_call_operand.vmem [shape: f32[8,128], index: 0, kind: input, shape index: {}]   ;;  %s339_s1 = inlined_call_operand.vmem [shape: f32[32,8], index: 1, kind: input, shape index: {}]   ;;  %s340_s2 = inlined_call_operand.vmem [shape: f32[32,1], index: 2, kind: input, shape index: {}]   ;;  %s341_s4 = inlined_call_operand.vmem [shape: f32[32,1], index: 4, kind: input, shape index: {}]   ;;  %s342_s6 = inlined_call_operand.vmem [shape: f32[8,1], index: 6, kind: input, shape index: {}]   ;;  %s343_s3 = inlined_call_operand.vmem [shape: f32[32,32], index: 3, kind: input, shape index: {}]   ;;  %s344_s5 = inlined_call_operand.vmem [shape: f32[8,32], index: 5, kind: input, shape index: {}]   ;;  %s345_s7 = inlined_call_operand.vmem [shape: f32[8,128], index: 7, kind: output, shape index: {}]  }
   0x1   :  { %v26_v0 = vld [vmem:[%s338_s0] sm:$0xff]  ;;  %226 = vset.pattern.permute.xlu1 %v228_v2  ;;  %225 = vset.pattern.permute.xlu0 %v228_v2  ;;  %v30_v3 = vld [vmem:[%s339_s1 + $0x18] sm:$0xff]  ;;  %v32_v5 = vld [vmem:[%s340_s2 + $0x8] sm:$0xff] }
   0x2   :  { %v27_v1 = vld [vmem:[%s339_s1] sm:$0xff]  ;;  %83 = vmatpush.msra.mxu0 %v26_v0  ;;  %219 = vmatpush.msra.mxu2 %v26_v0  ;;  %v34_v4 = vld [vmem:[%s340_s2 + $0x18] sm:$0xff]  ;;  %v28_v6 = vld [vmem:[%s339_s1 + $0x8] sm:$0xff] }
   0x3   :  { %210 = vmatmul.msk.f32.vlgmr.msra.gmra.mxu0 %vm55_vm0, %v27_v1  ;;  %213 = vmatmul.msk.f32.vlgmr.msra.gmra.mxu2 %vm55_vm0, %v30_v3  ;;  %v33_v7 = vld [vmem:[%s340_s2 + $0x10] sm:$0xff]  ;;  %v31_v8 = vld [vmem:[%s340_s2] sm:$0xff]  ;;  %v106_v10 = vld [vmem:[%s341_s4 + $0x8] sm:$0xff] }
   0x4   :  { %52 = vperm.xlu0 %225, %v34_v4   ;;  %42 = vperm.xlu1 %226, %v32_v5   ;;  %v29_v9 = vld [vmem:[%s339_s1 + $0x10] sm:$0xff]  ;;  %v105_v11 = vld [vmem:[%s341_s4] sm:$0xff]  ;;  %v108_v13 = vld [vmem:[%s341_s4 + $0x18] sm:$0xff] }
   0x5   :  { %227 = vset.pattern.permute.xlu2 %v228_v2  ;;  %v107_v20 = vld [vmem:[%s341_s4 + $0x10] sm:$0xff]  ;;  %v176_v26 = vld [vmem:[%s342_s6] sm:$0xff]  ;;  %v102_v33 = vld [vmem:[%s343_s3 + $0x8] sm:$0xff] }
   0x6   :  { %126 = vperm.xlu2 %227, %v108_v13   ;;  %v101_v31 = vld [vmem:[%s343_s3] sm:$0xff]  ;;  %v103_v32 = vld [vmem:[%s343_s3 + $0x10] sm:$0xff]  ;;  %v104_v34 = vld [vmem:[%s343_s3 + $0x18] sm:$0xff] }
   0x7   :  { %v175_v51 = vld [vmem:[%s344_s5] sm:$0xff] }
   0xb   :  { %211 = vmatmul.msk.f32.gmra.mxu0 %vm55_vm0, %v28_v6 }
   0xc   :  { %47 = vperm.xlu0 %225, %v33_v7   ;;  %37 = vperm.xlu1 %226, %v31_v8  }
   0xe   :  { %121 = vperm.xlu2 %227, %v107_v20  }
  0x13   :  { %212 = vmatmul.msk.f32.gmra.mxu0 %vm55_vm0, %v29_v9 }
  0x14   :  { %116 = vperm.xlu0 %225, %v106_v10   ;;  %111 = vperm.xlu1 %226, %v105_v11  }
  0x16   :  { %179 = vperm.xlu2 %227, %v176_v26  }
  0x60   :  { %v127_v35 = vpop.permute.xlu2 %126 }
  0x68   :  { %v122_v38 = vpop.permute.xlu2 %121 }
  0x70   :  { %v180_v52 = vpop.permute.xlu2 %179 }
  0x76   :  { %v53_v14 = vpop.permute.xlu0 %52  ;;  %v43_v15 = vpop.permute.xlu1 %42 }
  0x7e   :  { %v48_v21 = vpop.permute.xlu0 %47  ;;  %v38_v22 = vpop.permute.xlu1 %37 }
  0x80   :  { %v85_v12 = vpop.f32.mrf.mxu0 }
  0x81   :  { %v86_v27 = vadd.f32 %v85_v12, %v38_v22 }
  0x83   :  { %v97_v30 = vmax.f32 %v86_v27, 0.0 }
  0x86   :  { %v94_v16 = vpop.f32.mrf.mxu2  ;;  %v117_v43 = vpop.permute.xlu0 %116 }
  0x87   :  { %v95_v17 = vadd.f32 %v94_v16, %v53_v14  ;;  %v112_v46 = vpop.permute.xlu1 %111 }
  0x88   :  { %v88_v18 = vpop.f32.mrf.mxu0 }
  0x89   :  { %v100_v19 = vmax.f32 %v95_v17, 0.0  ;;  %v89_v24 = vadd.f32 %v88_v18, %v43_v15 }
  0x8b   :  { %154 = vmatpush.msra.mxu1 %v100_v19  ;;  %220 = vmatpush.msra.mxu3 %v100_v19  ;;  %v98_v29 = vmax.f32 %v89_v24, 0.0 }
  0x90   :  { %v91_v23 = vpop.f32.mrf.mxu0 }
  0x91   :  { %v92_v25 = vadd.f32 %v91_v23, %v48_v21 }
  0x93   :  { %v99_v28 = vmax.f32 %v92_v25, 0.0 }
  0x95   :  { %155 = vmatpush.msra.mxu1 %v99_v28  ;;  %221 = vmatpush.msra.mxu3 %v99_v28 }
  0x97   :  { %156 = vmatpush.msra.mxu1 %v98_v29  ;;  %222 = vmatpush.msra.mxu3 %v98_v29 }
  0x99   :  { %157 = vmatpush.msra.mxu1 %v97_v30  ;;  %223 = vmatpush.msra.mxu3 %v97_v30 }
  0x9a   :  { %214 = vmatmul.msk.f32.vlgmr.msra.gmra.mxu1 %vm129_vm1, %v101_v31  ;;  %216 = vmatmul.msk.f32.vlgmr.msra.gmra.mxu3 %vm129_vm1, %v103_v32 }
  0xa2   :  { %215 = vmatmul.msk.f32.gmra.mxu1 %vm129_vm1, %v102_v33  ;;  %217 = vmatmul.msk.f32.gmra.mxu3 %vm129_vm1, %v104_v34 }
 0x117   :  { %v159_v36 = vpop.f32.mrf.mxu1 }
 0x118   :  { %v160_v47 = vadd.f32 %v159_v36, %v112_v46 }
 0x11a   :  { %v171_v50 = vmax.f32 %v160_v47, 0.0 }
 0x11d   :  { %v165_v37 = vpop.f32.mrf.mxu3 }
 0x11e   :  { %v166_v41 = vadd.f32 %v165_v37, %v122_v38 }
 0x11f   :  { %v162_v39 = vpop.f32.mrf.mxu1 }
 0x120   :  { %v163_v44 = vadd.f32 %v162_v39, %v117_v43  ;;  %v173_v48 = vmax.f32 %v166_v41, 0.0 }
 0x122   :  { %v172_v49 = vmax.f32 %v163_v44, 0.0 }
 0x125   :  { %v168_v40 = vpop.f32.mrf.mxu3 }
 0x126   :  { %v169_v42 = vadd.f32 %v168_v40, %v127_v35 }
 0x128   :  { %v174_v45 = vmax.f32 %v169_v42, 0.0 }
 0x12a   :  { %197 = vmatpush.msrb.mxu2 %v174_v45 }
 0x12c   :  { %198 = vmatpush.msrb.mxu2 %v173_v48 }
 0x12e   :  { %199 = vmatpush.msrb.mxu2 %v172_v49 }
 0x130   :  { %200 = vmatpush.msrb.mxu2 %v171_v50 }
 0x131   :  { %218 = vmatmul.msk.f32.vlgmr.msrb.gmra.mxu2 %vm129_vm1, %v175_v51 }
 0x1b4   :  { %v202_v53 = vpop.f32.mrf.mxu2 }
 0x1b5   :  { %v203_v54 = vadd.f32 %v202_v53, %v180_v52 }
 0x1b7   :  { %205 = vst [vmem:[%s345_s7] sm:$0xff] %v203_v54 }

</bundles_post_ra>
